<compile_context>
chip_gen: v5e
topology: v5e:2x2
jax: 0.10.0
libtpu: 0.0.40
codegen_flags: <defaults>
</compile_context>

<pallas_src>
import functools

import jax
import jax.numpy as jnp
from jax.experimental import pallas as pl
from jax.experimental.pallas import tpu as pltpu


# ----------------------------- Fused Pallas kernel ---------------------------

def _fused_gcn_kernel(x_ref, adj_ref,
                      w1_first_ref, w2_first_ref, b_first_ref,
                      w1_mid_ref, w2_mid_ref, b_mid_ref,
                      w1_last_ref, w2_last_ref, b_last_ref,
                      w_fc_ref, b_fc_ref,
                      out_ref, *, n_mid):
    """Entire GCN forward for Bb batch elements, activations resident in VMEM.

    x_ref:   (Bb, N, F)              adj_ref: (Bb, N, N)   (compute dtype)
    w1_*/w2_*: weight matrices in compute dtype, b_*: pre-summed biases (f32)
    w1_mid/w2_mid: (2*n_mid, S, S)   b_mid: (2*n_mid, 1, S)
    w_fc:    (S, O_pad)              b_fc:  (1, O_pad)
    out_ref: (Bb, N, O_pad)
    """
    Bb, N, F = x_ref.shape
    cdt = w1_first_ref.dtype                 # compute (MXU operand) dtype

    adj = adj_ref[...]                       # (Bb, N, N), resident for all layers
    x = x_ref[...].reshape(Bb * N, F)        # flatten nodes across the batch block

    def gconv(h, w1, w2, b):
        # GraphConvolution: fc1(h) + fc2(adj @ h).
        # Per-node GEMMs run on (Bb*N, C); only the aggregation is batched.
        h_c = h.astype(cdt)
        hb = h_c.reshape(Bb, N, h_c.shape[-1])
        agg = jnp.einsum('bij,bjc->bic', adj, hb,
                         preferred_element_type=jnp.float32)          # (Bb, N, C)
        agg = agg.reshape(Bb * N, -1).astype(cdt)
        return (jnp.dot(h_c, w1, preferred_element_type=jnp.float32)
                + jnp.dot(agg, w2, preferred_element_type=jnp.float32)
                + b)                                                  # bias stays f32

    def res_block(h, w1a, w2a, ba, w1b, w2b, bb):
        o1 = jnp.maximum(gconv(h, w1a, w2a, ba), 0.0)
        return jnp.maximum(gconv(o1, w1b, w2b, bb) + h, 0.0)

    # first_gcn + relu
    out = jnp.maximum(
        gconv(x, w1_first_ref[...], w2_first_ref[...], b_first_ref[...]), 0.0)

    # middle residual blocks
    if n_mid > 2:
        # Deep nets: rolled loop keeps one layer's activations live at a time.
        def body(i, h):
            j = 2 * i
            return res_block(h,
                             w1_mid_ref[j], w2_mid_ref[j], b_mid_ref[j],
                             w1_mid_ref[j + 1], w2_mid_ref[j + 1], b_mid_ref[j + 1])
        out = jax.lax.fori_loop(0, n_mid, body, out)
    else:
        for i in range(n_mid):
            j = 2 * i
            out = res_block(out,
                            w1_mid_ref[j], w2_mid_ref[j], b_mid_ref[j],
                            w1_mid_ref[j + 1], w2_mid_ref[j + 1], b_mid_ref[j + 1])

    # last_gcn + relu
    out = jnp.maximum(
        gconv(out, w1_last_ref[...], w2_last_ref[...], b_last_ref[...]), 0.0)

    # final fc (output lanes zero-padded to O_pad for a lane-dense store)
    out = (jnp.dot(out.astype(cdt), w_fc_ref[...],
                   preferred_element_type=jnp.float32) + b_fc_ref[...])
    out_ref[...] = out.reshape(Bb, N, -1).astype(out_ref.dtype)


# ------------------------------- Param packing --------------------------------

def pack_gcn_params(params, o_pad, compute_dtype):
    """Keep W1/W2 separate (two-dot form), pre-sum biases, pad fc lanes."""
    cdt = compute_dtype

    def pack_gc(p):
        w1, b1, w2, b2 = p
        return w1.astype(cdt), w2.astype(cdt), (b1 + b2).astype(jnp.float32)

    w1_f, w2_f, b_f = pack_gc(params["first_gcn"])

    mids = [pack_gc(p[name]) for p in params["middle"] for name in ("gcn_1", "gcn_2")]
    if mids:
        w1_m = jnp.stack([m[0] for m in mids])          # (2*n_mid, S, S)
        w2_m = jnp.stack([m[1] for m in mids])
        b_m = jnp.stack([m[2] for m in mids])           # (2*n_mid, 1, S)
    else:
        # layer_num == 2: tiny dummies, never read (zero-iteration loop).
        s = w1_f.shape[1]
        w1_m = jnp.zeros((1, s, s), cdt)
        w2_m = jnp.zeros((1, s, s), cdt)
        b_m = jnp.zeros((1, 1, s), jnp.float32)

    w1_l, w2_l, b_l = pack_gc(params["last_gcn"])

    w_fc, b_fc = params["fc"]
    o = w_fc.shape[1]
    w_fc_p = jnp.pad(w_fc, ((0, 0), (0, o_pad - o))).astype(cdt)
    b_fc_p = jnp.pad(b_fc, ((0, 0), (0, o_pad - o))).astype(jnp.float32)

    return (w1_f, w2_f, b_f, w1_m, w2_m, b_m, w1_l, w2_l, b_l, w_fc_p, b_fc_p)


# ------------------------------- Helpers ---------------------------------------

def _const_map(nd):
    return lambda b: (0,) * nd


def _pick_block_batch(B, N, target_rows=256):
    """Bb so that Bb*N ~ target MXU rows, >=2 grid steps when B allows (v7x 2 TCs)."""
    bb = max(1, min(B, target_rows // max(N, 1)))
    if B >= 2:
        bb = max(1, min(bb, B // 2))
    while B % bb:
        bb -= 1
    return bb


def _pick_vmem_limit(block_bytes):
    """Generation-aware scoped-VMEM limit: cover the (double-buffered) blocks with
    headroom, capped at 75% of the physical VMEM (v7x: ~48 MiB; v5e/v6e: ~96 MiB)."""
    try:
        cap = pltpu.get_tpu_info().vmem_capacity_bytes
    except Exception:
        cap = 64 * 1024 * 1024          # assume the smallest (v7x) if the query fails
    need = 2 * block_bytes + (16 << 20)
    return int(min(max(32 << 20, need), (cap * 3) // 4))


# ------------------------------- Forward wrapper -------------------------------

def gcn_forward(x, adj, params, *, compute_dtype=jnp.float32, block_batch=None):
    B, N, F = x.shape
    S = params["first_gcn"][0].shape[1]
    out_dim = params["fc"][0].shape[1]
    n_mid = len(params["middle"])
    o_pad = 128 * pl.cdiv(out_dim, 128)          # lane-dense output store

    Bb = block_batch if block_batch is not None else _pick_block_batch(B, N)
    assert B % Bb == 0
    grid = (B // Bb,)

    packed = pack_gcn_params(params, o_pad, compute_dtype)
    x_c = x.astype(compute_dtype)
    adj_c = adj.astype(compute_dtype)

    kern = functools.partial(_fused_gcn_kernel, n_mid=n_mid)

    # Advisory cost estimate for XLA's scheduler.
    def gc_flops(fin, fout):
        return 2 * B * N * N * fin + 4 * B * N * fin * fout
    flops = gc_flops(F, S) + (2 * n_mid + 1) * gc_flops(S, S) + 2 * B * N * S * o_pad
    bytes_accessed = (sum(int(a.size) * a.dtype.itemsize for a in (x_c, adj_c, *packed))
                      + B * N * o_pad * 4)
    cost = pl.CostEstimate(flops=int(flops), transcendentals=0,
                           bytes_accessed=int(bytes_accessed))

    block_bytes = (Bb * N * F * x_c.dtype.itemsize
                   + Bb * N * N * adj_c.dtype.itemsize
                   + Bb * N * o_pad * 4
                   + sum(int(a.size) * a.dtype.itemsize for a in packed))

    in_specs = [
        pl.BlockSpec((Bb, N, F), lambda b: (b, 0, 0)),     # x (batch block)
        pl.BlockSpec((Bb, N, N), lambda b: (b, 0, 0)),     # adj (DMA'd once per block)
    ] + [pl.BlockSpec(p.shape, _const_map(p.ndim)) for p in packed]

    out_padded = pl.pallas_call(
        kern,
        out_shape=jax.ShapeDtypeStruct((B, N, o_pad), jnp.float32),
        grid=grid,
        in_specs=in_specs,
        out_specs=pl.BlockSpec((Bb, N, o_pad), lambda b: (b, 0, 0)),
        compiler_params=pltpu.CompilerParams(
            dimension_semantics=("parallel",),     # batch blocks shard across v7x's 2 TCs
            vmem_limit_bytes=_pick_vmem_limit(block_bytes),
        ),
        cost_estimate=cost,
    )(x_c, adj_c, *packed)

    # Note: for very large B*N the padded store + this slice become the dominant HBM
    # traffic; a nodes-on-lanes output layout would avoid it.  Irrelevant at these sizes.
    return out_padded[..., :out_dim]


# ----------------------------- Parameter init ---------------------------------

def _init_linear(key, fan_in, fan_out):
    """Matches nn.Linear default init; weight stored as (in, out) for h @ W."""
    kw, kb = jax.random.split(key)
    bound = 1.0 / jnp.sqrt(float(fan_in))
    w = jax.random.uniform(kw, (fan_in, fan_out), jnp.float32, -bound, bound)
    b = jax.random.uniform(kb, (1, fan_out), jnp.float32, -bound, bound)
    return w, b


def init_gcn_params(key, state_dim, feature_dim, out_dim, layer_num):
    keys = jax.random.split(key, 4 * layer_num + 8)
    it = iter(keys)

    def gconv(fan_in, fan_out):
        w1, b1 = _init_linear(next(it), fan_in, fan_out)
        w2, b2 = _init_linear(next(it), fan_in, fan_out)
        return (w1, b1, w2, b2)

    return {
        "first_gcn": gconv(feature_dim, state_dim),
        "middle": [
            {"gcn_1": gconv(state_dim, state_dim),
             "gcn_2": gconv(state_dim, state_dim)}
            for _ in range(layer_num - 2)
        ],
        "last_gcn": gconv(state_dim, state_dim),
        "fc": _init_linear(next(it), state_dim, out_dim),
    }


# ------------------------------- Pure-JAX reference ----------------------------

def gcn_forward_ref(x, adj, params):
    hp = jax.lax.Precision.HIGHEST

    def mm(a, b):
        return jnp.matmul(a, b, precision=hp)

    def gc(h, w1, b1, w2, b2):
        return mm(h, w1) + b1 + mm(mm(adj, h), w2) + b2

    out = jax.nn.relu(gc(x, *params["first_gcn"]))
    for p in params["middle"]:
        o1 = jax.nn.relu(gc(out, *p["gcn_1"]))
        out = jax.nn.relu(gc(o1, *p["gcn_2"]) + out)
    out = jax.nn.relu(gc(out, *params["last_gcn"]))
    w, b = params["fc"]
    return mm(out, w) + b


# ---------------------------------- Main ----------------------------------------

if __name__ == "__main__":
    key = jax.random.PRNGKey(0)

    cases = [
        # (B, N, state, feat, out, layers, compute_dtype, atol, rtol)
        (4, 16, 32, 32, 2, 4, jnp.float32, 1e-3, 1e-3),    # unrolled middle path
        (2, 16, 32, 32, 2, 8, jnp.float32, 1e-3, 1e-3),    # deep: fori_loop middle path
        (4, 16, 32, 32, 2, 4, jnp.bfloat16, 1e-1, 1e-1),   # bf16 MXU operands (v6e/v7x mode)
    ]

    for idx, (B, N, S, F, O, L, cdt, atol, rtol) in enumerate(cases):
        kk = jax.random.fold_in(key, idx)
        kx, kadj, kp = jax.random.split(kk, 3)

        x = jax.random.normal(kx, (B, N, F), dtype=jnp.float32)
        # Row-normalized dense adjacency (any (B, N, N) float matrix is valid input).
        adj_raw = jax.random.uniform(kadj, (B, N, N), dtype=jnp.float32)
        adj = adj_raw / jnp.sum(adj_raw, axis=-1, keepdims=True)

        params = init_gcn_params(kp, S, F, O, L)

        fwd = jax.jit(functools.partial(gcn_forward, compute_dtype=cdt))
        out = jax.block_until_ready(fwd(x, adj, params))

        ref = gcn_forward_ref(x, adj, params)
        assert out.shape == (B, N, O)
        max_err = float(jnp.max(jnp.abs(out - ref)))
        assert jnp.allclose(out, ref, atol=atol, rtol=rtol), (idx, max_err)

    print("KERNEL_OK")
</pallas_src>

<mosaic_0001>
module attributes {stable_mosaic.version = 11 : i64} {
  func.func @_fused_gcn_kernel(%arg0: i32, %arg1: memref<2x16x32xf32, #tpu.memory_space<vmem>>, %arg2: memref<2x16x16xf32, #tpu.memory_space<vmem>>, %arg3: memref<32x32xf32, #tpu.memory_space<vmem>>, %arg4: memref<32x32xf32, #tpu.memory_space<vmem>>, %arg5: memref<1x32xf32, #tpu.memory_space<vmem>>, %arg6: memref<4x32x32xf32, #tpu.memory_space<vmem>>, %arg7: memref<4x32x32xf32, #tpu.memory_space<vmem>>, %arg8: memref<4x1x32xf32, #tpu.memory_space<vmem>>, %arg9: memref<32x32xf32, #tpu.memory_space<vmem>>, %arg10: memref<32x32xf32, #tpu.memory_space<vmem>>, %arg11: memref<1x32xf32, #tpu.memory_space<vmem>>, %arg12: memref<32x128xf32, #tpu.memory_space<vmem>>, %arg13: memref<1x128xf32, #tpu.memory_space<vmem>>, %arg14: memref<2x16x128xf32, #tpu.memory_space<vmem>>) attributes {dimension_semantics = [#tpu.dimension_semantics<parallel>], iteration_bounds = array<i64: 2>, scalar_prefetch = 0 : i64, scratch_operands = 0 : i64, tpu.core_type = #tpu.core_type<tc>, window_params = [{transform_indices = @transform_0, window_bounds = array<i64: 2, 16, 32>}, {transform_indices = @transform_1, window_bounds = array<i64: 2, 16, 16>}, {pipeline_mode = #tpu.pipeline_mode<synchronous>, transform_indices = @transform_2, window_bounds = array<i64: 32, 32>}, {pipeline_mode = #tpu.pipeline_mode<synchronous>, transform_indices = @transform_3, window_bounds = array<i64: 32, 32>}, {pipeline_mode = #tpu.pipeline_mode<synchronous>, transform_indices = @transform_4, window_bounds = array<i64: 1, 32>}, {pipeline_mode = #tpu.pipeline_mode<synchronous>, transform_indices = @transform_5, window_bounds = array<i64: 4, 32, 32>}, {pipeline_mode = #tpu.pipeline_mode<synchronous>, transform_indices = @transform_6, window_bounds = array<i64: 4, 32, 32>}, {pipeline_mode = #tpu.pipeline_mode<synchronous>, transform_indices = @transform_7, window_bounds = array<i64: 4, 1, 32>}, {pipeline_mode = #tpu.pipeline_mode<synchronous>, transform_indices = @transform_8, window_bounds = array<i64: 32, 32>}, {pipeline_mode = #tpu.pipeline_mode<synchronous>, transform_indices = @transform_9, window_bounds = array<i64: 32, 32>}, {pipeline_mode = #tpu.pipeline_mode<synchronous>, transform_indices = @transform_10, window_bounds = array<i64: 1, 32>}, {pipeline_mode = #tpu.pipeline_mode<synchronous>, transform_indices = @transform_11, window_bounds = array<i64: 32, 128>}, {pipeline_mode = #tpu.pipeline_mode<synchronous>, transform_indices = @transform_12, window_bounds = array<i64: 1, 128>}, {transform_indices = @transform_13, window_bounds = array<i64: 2, 16, 128>}]} {
    %c0 = arith.constant 0 : index
    %c0_0 = arith.constant 0 : index
    %c0_1 = arith.constant 0 : index
    %0 = vector.load %arg2[%c0, %c0_0, %c0_1] : memref<2x16x16xf32, #tpu.memory_space<vmem>>, vector<2x16x16xf32>
    %c0_2 = arith.constant 0 : index
    %c0_3 = arith.constant 0 : index
    %c0_4 = arith.constant 0 : index
    %1 = vector.load %arg1[%c0_2, %c0_3, %c0_4] : memref<2x16x32xf32, #tpu.memory_space<vmem>>, vector<2x16x32xf32>
    %2 = vector.shape_cast %1 : vector<2x16x32xf32> to vector<32x32xf32>
    %c0_5 = arith.constant 0 : index
    %c0_6 = arith.constant 0 : index
    %3 = vector.load %arg3[%c0_5, %c0_6] : memref<32x32xf32, #tpu.memory_space<vmem>>, vector<32x32xf32>
    %c0_7 = arith.constant 0 : index
    %c0_8 = arith.constant 0 : index
    %4 = vector.load %arg4[%c0_7, %c0_8] : memref<32x32xf32, #tpu.memory_space<vmem>>, vector<32x32xf32>
    %c0_9 = arith.constant 0 : index
    %c0_10 = arith.constant 0 : index
    %5 = vector.load %arg5[%c0_9, %c0_10] : memref<1x32xf32, #tpu.memory_space<vmem>>, vector<1x32xf32>
    %6 = vector.shape_cast %2 : vector<32x32xf32> to vector<2x16x32xf32>
    "tpu.trace_start"() <{level = 10 : i32, message = "bij,bjc->bic"}> : () -> ()
    %cst = arith.constant dense<0.000000e+00> : vector<2x16x32xf32>
    %7 = tpu.matmul %0, %6, %cst {dimension_numbers = #tpu.dot_dimension_numbers<[2], [1], [1], [2], [0, 0, 0, 1, 1, 2], [0], [0]>} : vector<2x16x16xf32>, vector<2x16x32xf32>, vector<2x16x32xf32> -> vector<2x16x32xf32>
    "tpu.trace_stop"() : () -> ()
    %8 = vector.shape_cast %7 : vector<2x16x32xf32> to vector<32x32xf32>
    %cst_11 = arith.constant dense<0.000000e+00> : vector<32x32xf32>
    %9 = tpu.matmul %2, %3, %cst_11 {dimension_numbers = #tpu.dot_dimension_numbers<[1], [0], [0], [1], [0, 0, 1, 1], [], []>} : vector<32x32xf32>, vector<32x32xf32>, vector<32x32xf32> -> vector<32x32xf32>
    %cst_12 = arith.constant dense<0.000000e+00> : vector<32x32xf32>
    %10 = tpu.matmul %8, %4, %cst_12 {dimension_numbers = #tpu.dot_dimension_numbers<[1], [0], [0], [1], [0, 0, 1, 1], [], []>} : vector<32x32xf32>, vector<32x32xf32>, vector<32x32xf32> -> vector<32x32xf32>
    %11 = arith.addf %9, %10 : vector<32x32xf32>
    %12 = vector.broadcast %5 : vector<1x32xf32> to vector<32x32xf32>
    %13 = arith.addf %11, %12 : vector<32x32xf32>
    %cst_13 = arith.constant 0.000000e+00 : f32
    %14 = vector.broadcast %cst_13 : f32 to vector<32x32xf32>
    %15 = arith.maximumf %13, %14 : vector<32x32xf32>
    %c0_14 = arith.constant 0 : index
    %c0_15 = arith.constant 0 : index
    %c0_16 = arith.constant 0 : index
    %16 = vector.load %arg6[%c0_14, %c0_15, %c0_16] : memref<4x32x32xf32, #tpu.memory_space<vmem>>, vector<1x32x32xf32>
    %17 = vector.shape_cast %16 : vector<1x32x32xf32> to vector<32x32xf32>
    %c0_17 = arith.constant 0 : index
    %c0_18 = arith.constant 0 : index
    %c0_19 = arith.constant 0 : index
    %18 = vector.load %arg7[%c0_17, %c0_18, %c0_19] : memref<4x32x32xf32, #tpu.memory_space<vmem>>, vector<1x32x32xf32>
    %19 = vector.shape_cast %18 : vector<1x32x32xf32> to vector<32x32xf32>
    %c0_20 = arith.constant 0 : index
    %c0_21 = arith.constant 0 : index
    %c0_22 = arith.constant 0 : index
    %20 = vector.load %arg8[%c0_20, %c0_21, %c0_22] : memref<4x1x32xf32, #tpu.memory_space<vmem>>, vector<1x1x32xf32>
    %21 = vector.shape_cast %20 : vector<1x1x32xf32> to vector<1x32xf32>
    %c1 = arith.constant 1 : index
    %c0_23 = arith.constant 0 : index
    %c0_24 = arith.constant 0 : index
    %22 = vector.load %arg6[%c1, %c0_23, %c0_24] : memref<4x32x32xf32, #tpu.memory_space<vmem>>, vector<1x32x32xf32>
    %23 = vector.shape_cast %22 : vector<1x32x32xf32> to vector<32x32xf32>
    %c1_25 = arith.constant 1 : index
    %c0_26 = arith.constant 0 : index
    %c0_27 = arith.constant 0 : index
    %24 = vector.load %arg7[%c1_25, %c0_26, %c0_27] : memref<4x32x32xf32, #tpu.memory_space<vmem>>, vector<1x32x32xf32>
    %25 = vector.shape_cast %24 : vector<1x32x32xf32> to vector<32x32xf32>
    %c1_28 = arith.constant 1 : index
    %c0_29 = arith.constant 0 : index
    %c0_30 = arith.constant 0 : index
    %26 = vector.load %arg8[%c1_28, %c0_29, %c0_30] : memref<4x1x32xf32, #tpu.memory_space<vmem>>, vector<1x1x32xf32>
    %27 = vector.shape_cast %26 : vector<1x1x32xf32> to vector<1x32xf32>
    %28 = vector.shape_cast %15 : vector<32x32xf32> to vector<2x16x32xf32>
    "tpu.trace_start"() <{level = 10 : i32, message = "bij,bjc->bic"}> : () -> ()
    %cst_31 = arith.constant dense<0.000000e+00> : vector<2x16x32xf32>
    %29 = tpu.matmul %0, %28, %cst_31 {dimension_numbers = #tpu.dot_dimension_numbers<[2], [1], [1], [2], [0, 0, 0, 1, 1, 2], [0], [0]>} : vector<2x16x16xf32>, vector<2x16x32xf32>, vector<2x16x32xf32> -> vector<2x16x32xf32>
    "tpu.trace_stop"() : () -> ()
    %30 = vector.shape_cast %29 : vector<2x16x32xf32> to vector<32x32xf32>
    %cst_32 = arith.constant dense<0.000000e+00> : vector<32x32xf32>
    %31 = tpu.matmul %15, %17, %cst_32 {dimension_numbers = #tpu.dot_dimension_numbers<[1], [0], [0], [1], [0, 0, 1, 1], [], []>} : vector<32x32xf32>, vector<32x32xf32>, vector<32x32xf32> -> vector<32x32xf32>
    %cst_33 = arith.constant dense<0.000000e+00> : vector<32x32xf32>
    %32 = tpu.matmul %30, %19, %cst_33 {dimension_numbers = #tpu.dot_dimension_numbers<[1], [0], [0], [1], [0, 0, 1, 1], [], []>} : vector<32x32xf32>, vector<32x32xf32>, vector<32x32xf32> -> vector<32x32xf32>
    %33 = arith.addf %31, %32 : vector<32x32xf32>
    %34 = vector.broadcast %21 : vector<1x32xf32> to vector<32x32xf32>
    %35 = arith.addf %33, %34 : vector<32x32xf32>
    %cst_34 = arith.constant 0.000000e+00 : f32
    %36 = vector.broadcast %cst_34 : f32 to vector<32x32xf32>
    %37 = arith.maximumf %35, %36 : vector<32x32xf32>
    %38 = vector.shape_cast %37 : vector<32x32xf32> to vector<2x16x32xf32>
    "tpu.trace_start"() <{level = 10 : i32, message = "bij,bjc->bic"}> : () -> ()
    %cst_35 = arith.constant dense<0.000000e+00> : vector<2x16x32xf32>
    %39 = tpu.matmul %0, %38, %cst_35 {dimension_numbers = #tpu.dot_dimension_numbers<[2], [1], [1], [2], [0, 0, 0, 1, 1, 2], [0], [0]>} : vector<2x16x16xf32>, vector<2x16x32xf32>, vector<2x16x32xf32> -> vector<2x16x32xf32>
    "tpu.trace_stop"() : () -> ()
    %40 = vector.shape_cast %39 : vector<2x16x32xf32> to vector<32x32xf32>
    %cst_36 = arith.constant dense<0.000000e+00> : vector<32x32xf32>
    %41 = tpu.matmul %37, %23, %cst_36 {dimension_numbers = #tpu.dot_dimension_numbers<[1], [0], [0], [1], [0, 0, 1, 1], [], []>} : vector<32x32xf32>, vector<32x32xf32>, vector<32x32xf32> -> vector<32x32xf32>
    %cst_37 = arith.constant dense<0.000000e+00> : vector<32x32xf32>
    %42 = tpu.matmul %40, %25, %cst_37 {dimension_numbers = #tpu.dot_dimension_numbers<[1], [0], [0], [1], [0, 0, 1, 1], [], []>} : vector<32x32xf32>, vector<32x32xf32>, vector<32x32xf32> -> vector<32x32xf32>
    %43 = arith.addf %41, %42 : vector<32x32xf32>
    %44 = vector.broadcast %27 : vector<1x32xf32> to vector<32x32xf32>
    %45 = arith.addf %43, %44 : vector<32x32xf32>
    %46 = arith.addf %45, %15 : vector<32x32xf32>
    %cst_38 = arith.constant 0.000000e+00 : f32
    %47 = vector.broadcast %cst_38 : f32 to vector<32x32xf32>
    %48 = arith.maximumf %46, %47 : vector<32x32xf32>
    %c2 = arith.constant 2 : index
    %c0_39 = arith.constant 0 : index
    %c0_40 = arith.constant 0 : index
    %49 = vector.load %arg6[%c2, %c0_39, %c0_40] : memref<4x32x32xf32, #tpu.memory_space<vmem>>, vector<1x32x32xf32>
    %50 = vector.shape_cast %49 : vector<1x32x32xf32> to vector<32x32xf32>
    %c2_41 = arith.constant 2 : index
    %c0_42 = arith.constant 0 : index
    %c0_43 = arith.constant 0 : index
    %51 = vector.load %arg7[%c2_41, %c0_42, %c0_43] : memref<4x32x32xf32, #tpu.memory_space<vmem>>, vector<1x32x32xf32>
    %52 = vector.shape_cast %51 : vector<1x32x32xf32> to vector<32x32xf32>
    %c2_44 = arith.constant 2 : index
    %c0_45 = arith.constant 0 : index
    %c0_46 = arith.constant 0 : index
    %53 = vector.load %arg8[%c2_44, %c0_45, %c0_46] : memref<4x1x32xf32, #tpu.memory_space<vmem>>, vector<1x1x32xf32>
    %54 = vector.shape_cast %53 : vector<1x1x32xf32> to vector<1x32xf32>
    %c3 = arith.constant 3 : index
    %c0_47 = arith.constant 0 : index
    %c0_48 = arith.constant 0 : index
    %55 = vector.load %arg6[%c3, %c0_47, %c0_48] : memref<4x32x32xf32, #tpu.memory_space<vmem>>, vector<1x32x32xf32>
    %56 = vector.shape_cast %55 : vector<1x32x32xf32> to vector<32x32xf32>
    %c3_49 = arith.constant 3 : index
    %c0_50 = arith.constant 0 : index
    %c0_51 = arith.constant 0 : index
    %57 = vector.load %arg7[%c3_49, %c0_50, %c0_51] : memref<4x32x32xf32, #tpu.memory_space<vmem>>, vector<1x32x32xf32>
    %58 = vector.shape_cast %57 : vector<1x32x32xf32> to vector<32x32xf32>
    %c3_52 = arith.constant 3 : index
    %c0_53 = arith.constant 0 : index
    %c0_54 = arith.constant 0 : index
    %59 = vector.load %arg8[%c3_52, %c0_53, %c0_54] : memref<4x1x32xf32, #tpu.memory_space<vmem>>, vector<1x1x32xf32>
    %60 = vector.shape_cast %59 : vector<1x1x32xf32> to vector<1x32xf32>
    %61 = vector.shape_cast %48 : vector<32x32xf32> to vector<2x16x32xf32>
    "tpu.trace_start"() <{level = 10 : i32, message = "bij,bjc->bic"}> : () -> ()
    %cst_55 = arith.constant dense<0.000000e+00> : vector<2x16x32xf32>
    %62 = tpu.matmul %0, %61, %cst_55 {dimension_numbers = #tpu.dot_dimension_numbers<[2], [1], [1], [2], [0, 0, 0, 1, 1, 2], [0], [0]>} : vector<2x16x16xf32>, vector<2x16x32xf32>, vector<2x16x32xf32> -> vector<2x16x32xf32>
    "tpu.trace_stop"() : () -> ()
    %63 = vector.shape_cast %62 : vector<2x16x32xf32> to vector<32x32xf32>
    %cst_56 = arith.constant dense<0.000000e+00> : vector<32x32xf32>
    %64 = tpu.matmul %48, %50, %cst_56 {dimension_numbers = #tpu.dot_dimension_numbers<[1], [0], [0], [1], [0, 0, 1, 1], [], []>} : vector<32x32xf32>, vector<32x32xf32>, vector<32x32xf32> -> vector<32x32xf32>
    %cst_57 = arith.constant dense<0.000000e+00> : vector<32x32xf32>
    %65 = tpu.matmul %63, %52, %cst_57 {dimension_numbers = #tpu.dot_dimension_numbers<[1], [0], [0], [1], [0, 0, 1, 1], [], []>} : vector<32x32xf32>, vector<32x32xf32>, vector<32x32xf32> -> vector<32x32xf32>
    %66 = arith.addf %64, %65 : vector<32x32xf32>
    %67 = vector.broadcast %54 : vector<1x32xf32> to vector<32x32xf32>
    %68 = arith.addf %66, %67 : vector<32x32xf32>
    %cst_58 = arith.constant 0.000000e+00 : f32
    %69 = vector.broadcast %cst_58 : f32 to vector<32x32xf32>
    %70 = arith.maximumf %68, %69 : vector<32x32xf32>
    %71 = vector.shape_cast %70 : vector<32x32xf32> to vector<2x16x32xf32>
    "tpu.trace_start"() <{level = 10 : i32, message = "bij,bjc->bic"}> : () -> ()
    %cst_59 = arith.constant dense<0.000000e+00> : vector<2x16x32xf32>
    %72 = tpu.matmul %0, %71, %cst_59 {dimension_numbers = #tpu.dot_dimension_numbers<[2], [1], [1], [2], [0, 0, 0, 1, 1, 2], [0], [0]>} : vector<2x16x16xf32>, vector<2x16x32xf32>, vector<2x16x32xf32> -> vector<2x16x32xf32>
    "tpu.trace_stop"() : () -> ()
    %73 = vector.shape_cast %72 : vector<2x16x32xf32> to vector<32x32xf32>
    %cst_60 = arith.constant dense<0.000000e+00> : vector<32x32xf32>
    %74 = tpu.matmul %70, %56, %cst_60 {dimension_numbers = #tpu.dot_dimension_numbers<[1], [0], [0], [1], [0, 0, 1, 1], [], []>} : vector<32x32xf32>, vector<32x32xf32>, vector<32x32xf32> -> vector<32x32xf32>
    %cst_61 = arith.constant dense<0.000000e+00> : vector<32x32xf32>
    %75 = tpu.matmul %73, %58, %cst_61 {dimension_numbers = #tpu.dot_dimension_numbers<[1], [0], [0], [1], [0, 0, 1, 1], [], []>} : vector<32x32xf32>, vector<32x32xf32>, vector<32x32xf32> -> vector<32x32xf32>
    %76 = arith.addf %74, %75 : vector<32x32xf32>
    %77 = vector.broadcast %60 : vector<1x32xf32> to vector<32x32xf32>
    %78 = arith.addf %76, %77 : vector<32x32xf32>
    %79 = arith.addf %78, %48 : vector<32x32xf32>
    %cst_62 = arith.constant 0.000000e+00 : f32
    %80 = vector.broadcast %cst_62 : f32 to vector<32x32xf32>
    %81 = arith.maximumf %79, %80 : vector<32x32xf32>
    %c0_63 = arith.constant 0 : index
    %c0_64 = arith.constant 0 : index
    %82 = vector.load %arg9[%c0_63, %c0_64] : memref<32x32xf32, #tpu.memory_space<vmem>>, vector<32x32xf32>
    %c0_65 = arith.constant 0 : index
    %c0_66 = arith.constant 0 : index
    %83 = vector.load %arg10[%c0_65, %c0_66] : memref<32x32xf32, #tpu.memory_space<vmem>>, vector<32x32xf32>
    %c0_67 = arith.constant 0 : index
    %c0_68 = arith.constant 0 : index
    %84 = vector.load %arg11[%c0_67, %c0_68] : memref<1x32xf32, #tpu.memory_space<vmem>>, vector<1x32xf32>
    %85 = vector.shape_cast %81 : vector<32x32xf32> to vector<2x16x32xf32>
    "tpu.trace_start"() <{level = 10 : i32, message = "bij,bjc->bic"}> : () -> ()
    %cst_69 = arith.constant dense<0.000000e+00> : vector<2x16x32xf32>
    %86 = tpu.matmul %0, %85, %cst_69 {dimension_numbers = #tpu.dot_dimension_numbers<[2], [1], [1], [2], [0, 0, 0, 1, 1, 2], [0], [0]>} : vector<2x16x16xf32>, vector<2x16x32xf32>, vector<2x16x32xf32> -> vector<2x16x32xf32>
    "tpu.trace_stop"() : () -> ()
    %87 = vector.shape_cast %86 : vector<2x16x32xf32> to vector<32x32xf32>
    %cst_70 = arith.constant dense<0.000000e+00> : vector<32x32xf32>
    %88 = tpu.matmul %81, %82, %cst_70 {dimension_numbers = #tpu.dot_dimension_numbers<[1], [0], [0], [1], [0, 0, 1, 1], [], []>} : vector<32x32xf32>, vector<32x32xf32>, vector<32x32xf32> -> vector<32x32xf32>
    %cst_71 = arith.constant dense<0.000000e+00> : vector<32x32xf32>
    %89 = tpu.matmul %87, %83, %cst_71 {dimension_numbers = #tpu.dot_dimension_numbers<[1], [0], [0], [1], [0, 0, 1, 1], [], []>} : vector<32x32xf32>, vector<32x32xf32>, vector<32x32xf32> -> vector<32x32xf32>
    %90 = arith.addf %88, %89 : vector<32x32xf32>
    %91 = vector.broadcast %84 : vector<1x32xf32> to vector<32x32xf32>
    %92 = arith.addf %90, %91 : vector<32x32xf32>
    %cst_72 = arith.constant 0.000000e+00 : f32
    %93 = vector.broadcast %cst_72 : f32 to vector<32x32xf32>
    %94 = arith.maximumf %92, %93 : vector<32x32xf32>
    %c0_73 = arith.constant 0 : index
    %c0_74 = arith.constant 0 : index
    %95 = vector.load %arg12[%c0_73, %c0_74] : memref<32x128xf32, #tpu.memory_space<vmem>>, vector<32x128xf32>
    %cst_75 = arith.constant dense<0.000000e+00> : vector<32x128xf32>
    %96 = tpu.matmul %94, %95, %cst_75 {dimension_numbers = #tpu.dot_dimension_numbers<[1], [0], [0], [1], [0, 0, 1, 1], [], []>} : vector<32x32xf32>, vector<32x128xf32>, vector<32x128xf32> -> vector<32x128xf32>
    %c0_76 = arith.constant 0 : index
    %c0_77 = arith.constant 0 : index
    %97 = vector.load %arg13[%c0_76, %c0_77] : memref<1x128xf32, #tpu.memory_space<vmem>>, vector<1x128xf32>
    %98 = vector.broadcast %97 : vector<1x128xf32> to vector<32x128xf32>
    %99 = arith.addf %96, %98 : vector<32x128xf32>
    %100 = vector.shape_cast %99 : vector<32x128xf32> to vector<2x16x128xf32>
    %c0_78 = arith.constant 0 : index
    %c0_79 = arith.constant 0 : index
    %c0_80 = arith.constant 0 : index
    %101 = vector.load %arg14[%c0_78, %c0_79, %c0_80] : memref<2x16x128xf32, #tpu.memory_space<vmem>>, vector<2x16x128xf32>
    tpu.vector_store %arg14[%c0_78, %c0_79, %c0_80], %100 {strides = array<i32>} : memref<2x16x128xf32, #tpu.memory_space<vmem>>, vector<2x16x128xf32>,
    return
  }
  func.func @transform_0(%arg0: i32) -> (i32, i32, i32) {
    %c0_i32 = arith.constant 0 : i32
    %c0_i32_0 = arith.constant 0 : i32
    %c0_i32_1 = arith.constant 0 : i32
    return %arg0, %c0_i32, %c0_i32_0 : i32, i32, i32
  }
  func.func @transform_1(%arg0: i32) -> (i32, i32, i32) {
    %c0_i32 = arith.constant 0 : i32
    %c0_i32_0 = arith.constant 0 : i32
    %c0_i32_1 = arith.constant 0 : i32
    return %arg0, %c0_i32, %c0_i32_0 : i32, i32, i32
  }
  func.func @transform_2(%arg0: i32) -> (i32, i32) {
    %c0_i32 = arith.constant 0 : i32
    %c0_i32_0 = arith.constant 0 : i32
    %c0_i32_1 = arith.constant 0 : i32
    return %c0_i32, %c0_i32_0 : i32, i32
  }
  func.func @transform_3(%arg0: i32) -> (i32, i32) {
    %c0_i32 = arith.constant 0 : i32
    %c0_i32_0 = arith.constant 0 : i32
    %c0_i32_1 = arith.constant 0 : i32
    return %c0_i32, %c0_i32_0 : i32, i32
  }
  func.func @transform_4(%arg0: i32) -> (i32, i32) {
    %c0_i32 = arith.constant 0 : i32
    %c0_i32_0 = arith.constant 0 : i32
    %c0_i32_1 = arith.constant 0 : i32
    return %c0_i32, %c0_i32_0 : i32, i32
  }
  func.func @transform_5(%arg0: i32) -> (i32, i32, i32) {
    %c0_i32 = arith.constant 0 : i32
    %c0_i32_0 = arith.constant 0 : i32
    %c0_i32_1 = arith.constant 0 : i32
    %c0_i32_2 = arith.constant 0 : i32
    return %c0_i32, %c0_i32_0, %c0_i32_1 : i32, i32, i32
  }
  func.func @transform_6(%arg0: i32) -> (i32, i32, i32) {
    %c0_i32 = arith.constant 0 : i32
    %c0_i32_0 = arith.constant 0 : i32
    %c0_i32_1 = arith.constant 0 : i32
    %c0_i32_2 = arith.constant 0 : i32
    return %c0_i32, %c0_i32_0, %c0_i32_1 : i32, i32, i32
  }
  func.func @transform_7(%arg0: i32) -> (i32, i32, i32) {
    %c0_i32 = arith.constant 0 : i32
    %c0_i32_0 = arith.constant 0 : i32
    %c0_i32_1 = arith.constant 0 : i32
    %c0_i32_2 = arith.constant 0 : i32
    return %c0_i32, %c0_i32_0, %c0_i32_1 : i32, i32, i32
  }
  func.func @transform_8(%arg0: i32) -> (i32, i32) {
    %c0_i32 = arith.constant 0 : i32
    %c0_i32_0 = arith.constant 0 : i32
    %c0_i32_1 = arith.constant 0 : i32
    return %c0_i32, %c0_i32_0 : i32, i32
  }
  func.func @transform_9(%arg0: i32) -> (i32, i32) {
    %c0_i32 = arith.constant 0 : i32
    %c0_i32_0 = arith.constant 0 : i32
    %c0_i32_1 = arith.constant 0 : i32
    return %c0_i32, %c0_i32_0 : i32, i32
  }
  func.func @transform_10(%arg0: i32) -> (i32, i32) {
    %c0_i32 = arith.constant 0 : i32
    %c0_i32_0 = arith.constant 0 : i32
    %c0_i32_1 = arith.constant 0 : i32
    return %c0_i32, %c0_i32_0 : i32, i32
  }
  func.func @transform_11(%arg0: i32) -> (i32, i32) {
    %c0_i32 = arith.constant 0 : i32
    %c0_i32_0 = arith.constant 0 : i32
    %c0_i32_1 = arith.constant 0 : i32
    return %c0_i32, %c0_i32_0 : i32, i32
  }
  func.func @transform_12(%arg0: i32) -> (i32, i32) {
    %c0_i32 = arith.constant 0 : i32
    %c0_i32_0 = arith.constant 0 : i32
    %c0_i32_1 = arith.constant 0 : i32
    return %c0_i32, %c0_i32_0 : i32, i32
  }
  func.func @transform_13(%arg0: i32) -> (i32, i32, i32) {
    %c0_i32 = arith.constant 0 : i32
    %c0_i32_0 = arith.constant 0 : i32
    %c0_i32_1 = arith.constant 0 : i32
    return %arg0, %c0_i32, %c0_i32_0 : i32, i32, i32
  }
}

</mosaic_0001>

<bundles_post_ra>
// kernel: gcn_forward.1
= control target key start
LH: loop header
LB: loop body
LE: loop exit
PB: predicated region body
PF: predicated region fallthrough
CT: control target
= control target key end

     0   :  { %s1743_s25 = smov 0   ;;  %s2093_s0 = inlined_call_operand.vmem [shape: f32[4,16,32], index: 0, kind: input, shape index: {}]   ;;  %s2094_s1 = inlined_call_operand.vmem [shape: f32[4,16,16], index: 1, kind: input, shape index: {}]   ;;  %s2095_s2 = inlined_call_operand.vmem [shape: f32[32,32], index: 2, kind: input, shape index: {}]   ;;  %s2096_s3 = inlined_call_operand.vmem [shape: f32[32,32], index: 3, kind: input, shape index: {}]   ;;  %s2097_s4 = inlined_call_operand.vmem [shape: f32[1,32], index: 4, kind: input, shape index: {}]   ;;  %s2098_s5 = inlined_call_operand.vmem [shape: f32[4,32,32], index: 5, kind: input, shape index: {}]   ;;  %s2099_s6 = inlined_call_operand.vmem [shape: f32[4,32,32], index: 6, kind: input, shape index: {}]   ;;  %s2100_s7 = inlined_call_operand.vmem [shape: f32[4,1,32], index: 7, kind: input, shape index: {}]   ;;  %s2101_s8 = inlined_call_operand.vmem [shape: f32[32,32], index: 8, kind: input, shape index: {}]   ;;  %s2102_s9 = inlined_call_operand.vmem [shape: f32[32,32], index: 9, kind: input, shape index: {}]   ;;  %s2103_s10 = inlined_call_operand.vmem [shape: f32[1,32], index: 10, kind: input, shape index: {}]   ;;  %s2104_s11 = inlined_call_operand.vmem [shape: f32[32,128], index: 11, kind: input, shape index: {}]   ;;  %s2105_s12 = inlined_call_operand.vmem [shape: f32[1,128], index: 12, kind: input, shape index: {}]   ;;  %s2106_s13 = inlined_call_operand.vmem [shape: f32[4,16,128], index: 13, kind: output, shape index: {}]  }
   0x1 LB: > { %s1524_s26 = sadd.s32 4294967295, %s1671_s25   ;;  %p1528_p0 = scmp.ge.s32.totalorder %s1671_s25, 1  ;;  %s1671_s25 = sphi %s1743_s25, %s23_s25  }
   0x2   : > { %p401_p1 = scmp.lt.s32.totalorder %s1671_s25, 3 }
   0x4   : > { %p402_p2 = pnand %p1528_p0, %p401_p1 }
   0x5   : > { %s1529_s27 = sshll.u32 (!%p402_p2), %s1524_s26, 1 }
   0x6   : > { %405 = sbr.rel (%p402_p2) target bundleno = 1814 (0x716), region = 72  ;;  %p454_p3 = scmp.lt.s32.totalorder (!%p402_p2), %s1529_s27, 3 }
   0xb   : > { %s2108_s27 = smov (!%p454_p3, %s1529_s27), 3  ;;  %vm491_vm0 = vcmask 130048   ;;  %v489_v8 = vld [vmem:[%s2096_s3 + $0x18] sm:$0xff]  ;;  %v488_v10 = vld [vmem:[%s2096_s3 + $0x10] sm:$0xff]  ;;  %v487_v12 = vld [vmem:[%s2096_s3 + $0x8] sm:$0xff]  ;;  %vm550_vm1 = vcmask 261120  }
   0xc   : > { %s1751_s28 = sshll.u32 %s2108_s27, 4  ;;  %v485_v9 = vld [vmem:[%s2095_s2 + $0x18] sm:$0xff]  ;;  %v484_v11 = vld [vmem:[%s2095_s2 + $0x10] sm:$0xff]  ;;  %v483_v13 = vld [vmem:[%s2095_s2 + $0x8] sm:$0xff] }
   0xd   : > { %s458_s14 = scalar_lea.vmem %s2093_s0, %s1751_s28  ;;  %s465_s17 = scalar_lea.vmem %s2094_s1, %s1751_s28  ;;  %v486_v14 = vld [vmem:[%s2096_s3] sm:$0xff]  ;;  %v647_v41 = vld [vmem:[%s2098_s5 + $0x18] sm:$0xff]  ;;  %v646_v42 = vld [vmem:[%s2098_s5 + $0x10] sm:$0xff] }
   0xe   : > { %v479_v0 = vld [vmem:[%s458_s14 + $0x8] sm:$0xff]  ;;  %v478_v1 = vld [vmem:[%s458_s14] sm:$0xff]  ;;  %v481_v4 = vld [vmem:[%s458_s14 + $0x18] sm:$0xff]  ;;  %s472_s18 = scalar_lea.vmem %s2106_s13, %s1751_s28 }
   0xf   : > { %512 = vmatpush.msra.mxu0 %v479_v0  ;;  %1646 = vmatpush.msra.mxu2 %v479_v0  ;;  %v1761_v2 = vld [vmem:[%s465_s17] sm:$0xff]  ;;  %v1763_v3 = vld [vmem:[%s465_s17 + $0x8] sm:$0xff]  ;;  %v480_v5 = vld [vmem:[%s458_s14 + $0x10] sm:$0xff] }
  0x10   : > { %541 = vmatpush.msra.mxu1 %v481_v4  ;;  %1648 = vmatpush.msra.mxu3 %v481_v4  ;;  %v1765_v6 = vld [vmem:[%s465_s17 + $0x10] sm:$0xff]  ;;  %v1767_v7 = vld [vmem:[%s465_s17 + $0x18] sm:$0xff]  ;;  %v482_v15 = vld [vmem:[%s2095_s2] sm:$0xff] }
  0x11   : > { %513 = vmatpush.msra.mxu0 %v478_v1  ;;  %1647 = vmatpush.msra.mxu2 %v478_v1  ;;  %v1658_v24 = vld [vmem:[%s2097_s4] ss:$0 sm:$0xff]  ;;  %v645_v43 = vld [vmem:[%s2098_s5 + $0x8] sm:$0xff]  ;;  %v651_v45 = vld [vmem:[%s2099_s6 + $0x18] sm:$0xff] }
  0x12   : > { %1538 = vmatmul.msk.f32.vlgmr.msra.gmra.mxu0 %vm491_vm0, %v1761_v2  ;;  %1539 = vmatmul.msk.f32.vlgmr.msra.gmra.mxu2 %vm491_vm0, %v1763_v3  ;;  %v644_v44 = vld [vmem:[%s2098_s5] sm:$0xff]  ;;  %v650_v46 = vld [vmem:[%s2099_s6 + $0x10] sm:$0xff]  ;;  %v649_v47 = vld [vmem:[%s2099_s6 + $0x8] sm:$0xff] }
  0x13   : > { %542 = vmatpush.msra.mxu1 %v480_v5  ;;  %1649 = vmatpush.msra.mxu3 %v480_v5  ;;  %v648_v48 = vld [vmem:[%s2099_s6] sm:$0xff] }
  0x14   : > { %1540 = vmatmul.msk.f32.vlgmr.msra.gmra.mxu1 %vm491_vm0, %v1765_v6  ;;  %1541 = vmatmul.msk.f32.vlgmr.msra.gmra.mxu3 %vm491_vm0, %v1767_v7  ;;  %v1659_v57 = vld [vmem:[%s2100_s7] ss:$0 sm:$0xff] }
  0x15   : > { %575 = vmatpush.msrb.mxu2 %v489_v8  ;;  %616 = vmatpush.msrb.mxu3 %v485_v9 }
  0x17   : > { %576 = vmatpush.msrb.mxu2 %v488_v10  ;;  %617 = vmatpush.msrb.mxu3 %v484_v11 }
  0x19   : > { %577 = vmatpush.msrb.mxu2 %v487_v12  ;;  %618 = vmatpush.msrb.mxu3 %v483_v13 }
  0x1b   : > { %578 = vmatpush.msrb.mxu2 %v486_v14  ;;  %619 = vmatpush.msrb.mxu3 %v482_v15  ;;  %v1553_v14 = vld [vmem:[%s2098_s5 + $0x38] sm:$0xff]  ;;  %v1552_v15 = vld [vmem:[%s2098_s5 + $0x30] sm:$0xff] }
  0x1c   : > { %1546 = vmatmul.msk.f32.vlgmr.msrb.gmra.mxu3 %vm550_vm1, %v478_v1 }
  0x24   : > { %1547 = vmatmul.msk.f32.gmra.mxu3 %vm550_vm1, %v479_v0 }
  0x2c   : > { %1548 = vmatmul.msk.f32.gmra.mxu3 %vm550_vm1, %v480_v5 }
  0x34   : > { %1549 = vmatmul.msk.f32.gmra.mxu3 %vm550_vm1, %v481_v4 }
  0x8f   : > { %v515_v16 = vpop.f32.mrf.mxu0 }
  0x90   : > { %1542 = vmatmul.msk.f32.vlgmr.msrb.gmra.mxu2 %vm550_vm1, %v515_v16  ;;  %v1551_v16 = vld [vmem:[%s2098_s5 + $0x28] sm:$0xff] }
  0x91   : > { %v544_v18 = vpop.f32.mrf.mxu1 }
  0x95   : > { %v518_v17 = vpop.f32.mrf.mxu2 }
  0x97   : > { %v547_v19 = vpop.f32.mrf.mxu3 }
  0x98   : > { %1543 = vmatmul.msk.f32.gmra.mxu2 %vm550_vm1, %v518_v17  ;;  %v1550_v17 = vld [vmem:[%s2098_s5 + $0x20] sm:$0xff] }
  0x9f   : > { %v621_v20 = vpop.f32.mrf.mxu3 }
  0xa0   : > { %1544 = vmatmul.msk.f32.gmra.mxu2 %vm550_vm1, %v544_v18  ;;  %v1557_v18 = vld [vmem:[%s2099_s6 + $0x38] sm:$0xff] }
  0xa1   : > { %874 = vmatpush.msra.mxu2 %v1557_v18 }
  0xa7   : > { %v624_v22 = vpop.f32.mrf.mxu3 }
  0xa8   : > { %1545 = vmatmul.msk.f32.gmra.mxu2 %vm550_vm1, %v547_v19  ;;  %v1556_v19 = vld [vmem:[%s2099_s6 + $0x30] sm:$0xff] }
  0xa9   : > { %875 = vmatpush.msra.mxu2 %v1556_v19 }
  0xaf   : > { %v627_v29 = vpop.f32.mrf.mxu3 }
  0xb7   : > { %v630_v33 = vpop.f32.mrf.mxu3 }
 0x113   : > { %v580_v21 = vpop.f32.mrf.mxu2 }
 0x114   : > { %v622_v23 = vadd.f32 %v621_v20, %v580_v21  ;;  %v1555_v20 = vld [vmem:[%s2099_s6 + $0x28] sm:$0xff]  ;;  %v1554_v21 = vld [vmem:[%s2099_s6 + $0x20] sm:$0xff] }
 0x115   : > { %876 = vmatpush.msra.mxu2 %v1555_v20 }
 0x116   : > { %v636_v27 = vadd.f32 %v1658_v24, %v622_v23 }
 0x117   : > { %877 = vmatpush.msra.mxu2 %v1554_v21 }
 0x118   : > { %v1814_v31 = vmax.f32 %v636_v27, 0.0 }
 0x11b   : > { %v583_v25 = vpop.f32.mrf.mxu2 }
 0x11c   : > { %v625_v26 = vadd.f32 %v624_v22, %v583_v25 }
 0x11e   : > { %v637_v28 = vadd.f32 %v1658_v24, %v625_v26 }
 0x120   : > { %v1812_v30 = vmax.f32 %v637_v28, 0.0 }
 0x122   : > { %679 = vmatpush.msrb.mxu0 %v1812_v30 }
 0x123   : > { %v586_v32 = vpop.f32.mrf.mxu2 }
 0x124   : > { %680 = vmatpush.msrb.mxu0 %v1814_v31  ;;  %v628_v34 = vadd.f32 %v627_v29, %v586_v32  ;;  %v1660_v32 = vld [vmem:[%s2100_s7 + $0x1] ss:$0 sm:$0xff] }
 0x125   : > { %1559 = vmatmul.msk.f32.vlgmr.msrb.gmra.mxu0 %vm491_vm0, %v1761_v2 }
 0x126   : > { %v638_v37 = vadd.f32 %v1658_v24, %v628_v34  ;;  %735 = vmatpush.msra.mxu0 %v651_v45 }
 0x128   : > { %v1824_v40 = vmax.f32 %v638_v37, 0.0  ;;  %736 = vmatpush.msra.mxu0 %v650_v46 }
 0x12a   : > { %737 = vmatpush.msra.mxu0 %v649_v47 }
 0x12b   : > { %v589_v35 = vpop.f32.mrf.mxu2 }
 0x12c   : > { %v631_v36 = vadd.f32 %v630_v33, %v589_v35  ;;  %738 = vmatpush.msra.mxu0 %v648_v48 }
 0x12d   : > { %1560 = vmatmul.msk.f32.gmra.mxu0 %vm491_vm0, %v1763_v3 }
 0x12e   : > { %v639_v38 = vadd.f32 %v1658_v24, %v631_v36 }
 0x130   : > { %v1822_v39 = vmax.f32 %v639_v38, 0.0 }
 0x132   : > { %702 = vmatpush.msrb.mxu1 %v1822_v39 }
 0x134   : > { %703 = vmatpush.msrb.mxu1 %v1824_v40 }
 0x135   : > { %1561 = vmatmul.msk.f32.vlgmr.msrb.gmra.mxu1 %vm491_vm0, %v1765_v6 }
 0x136   : > { %776 = vmatpush.msra.mxu1 %v647_v41 }
 0x138   : > { %777 = vmatpush.msra.mxu1 %v646_v42 }
 0x13a   : > { %778 = vmatpush.msra.mxu1 %v645_v43 }
 0x13c   : > { %779 = vmatpush.msra.mxu1 %v644_v44 }
 0x13d   : > { %1562 = vmatmul.msk.f32.gmra.mxu1 %vm491_vm0, %v1767_v7 }
 0x145   : > { %1567 = vmatmul.msk.f32.vlgmr.msra.gmra.mxu1 %vm550_vm1, %v1814_v31 }
 0x14d   : > { %1568 = vmatmul.msk.f32.gmra.mxu1 %vm550_vm1, %v1812_v30 }
 0x155   : > { %1569 = vmatmul.msk.f32.gmra.mxu1 %vm550_vm1, %v1824_v40 }
 0x15d   : > { %1570 = vmatmul.msk.f32.gmra.mxu1 %vm550_vm1, %v1822_v39 }
 0x1a2   : > { %v682_v49 = vpop.f32.mrf.mxu0 }
 0x1a3   : > { %1563 = vmatmul.msk.f32.vlgmr.msra.gmra.mxu0 %vm550_vm1, %v682_v49 }
 0x1aa   : > { %v685_v50 = vpop.f32.mrf.mxu0 }
 0x1ab   : > { %1564 = vmatmul.msk.f32.gmra.mxu0 %vm550_vm1, %v685_v50 }
 0x1b2   : > { %v705_v51 = vpop.f32.mrf.mxu1 }
 0x1b3   : > { %1565 = vmatmul.msk.f32.gmra.mxu0 %vm550_vm1, %v705_v51 }
 0x1ba   : > { %v708_v52 = vpop.f32.mrf.mxu1 }
 0x1bb   : > { %1566 = vmatmul.msk.f32.gmra.mxu0 %vm550_vm1, %v708_v52 }
 0x1c2   : > { %v781_v53 = vpop.f32.mrf.mxu1 }
 0x1ca   : > { %v784_v55 = vpop.f32.mrf.mxu1 }
 0x1d2   : > { %v787_v63 = vpop.f32.mrf.mxu1 }
 0x1da   : > { %v790_v5 = vpop.f32.mrf.mxu1 }
 0x220   : > { %v740_v54 = vpop.f32.mrf.mxu0 }
 0x221   : > { %v782_v56 = vadd.f32 %v781_v53, %v740_v54  ;;  %v1586_v53 = vld [vmem:[%s2098_s5 + $0x58] sm:$0xff]  ;;  %v1583_v54 = vld [vmem:[%s2098_s5 + $0x40] sm:$0xff] }
 0x223   : > { %v796_v60 = vadd.f32 %v1659_v57, %v782_v56  ;;  %v1589_v56 = vld [vmem:[%s2099_s6 + $0x50] sm:$0xff] }
 0x225   : > { %v800_v0 = vmax.f32 %v796_v60, 0.0 }
 0x228   : > { %v743_v58 = vpop.f32.mrf.mxu0 }
 0x229   : > { %v785_v59 = vadd.f32 %v784_v55, %v743_v58  ;;  %v1590_v55 = vld [vmem:[%s2099_s6 + $0x58] sm:$0xff]  ;;  %v1587_v58 = vld [vmem:[%s2099_s6 + $0x40] sm:$0xff] }
 0x22b   : > { %v797_v61 = vadd.f32 %v1659_v57, %v785_v59 }
 0x22d   : > { %v801_v62 = vmax.f32 %v797_v61, 0.0 }
 0x22f   : > { %818 = vmatpush.msra.mxu3 %v801_v62 }
 0x230   : > { %v746_v1 = vpop.f32.mrf.mxu0 }
 0x231   : > { %819 = vmatpush.msra.mxu3 %v800_v0  ;;  %v788_v4 = vadd.f32 %v787_v63, %v746_v1 }
 0x232   : > { %1571 = vmatmul.msk.f32.vlgmr.msra.gmra.mxu3 %vm491_vm0, %v1761_v2 }
 0x233   : > { %v798_v10 = vadd.f32 %v1659_v57, %v788_v4 }
 0x235   : > { %v802_v13 = vmax.f32 %v798_v10, 0.0 }
 0x238   : > { %v749_v8 = vpop.f32.mrf.mxu0 }
 0x239   : > { %v791_v9 = vadd.f32 %v790_v5, %v749_v8  ;;  %v1661_v5 = vld [vmem:[%s2100_s7 + $0x2] ss:$0 sm:$0xff] }
 0x23a   : > { %1572 = vmatmul.msk.f32.gmra.mxu3 %vm491_vm0, %v1763_v3 }
 0x23b   : > { %v799_v11 = vadd.f32 %v1659_v57, %v791_v9  ;;  %v1588_v57 = vld [vmem:[%s2099_s6 + $0x48] sm:$0xff] }
 0x23d   : > { %v803_v12 = vmax.f32 %v799_v11, 0.0 }
 0x23f   : > { %841 = vmatpush.msrb.mxu3 %v803_v12 }
 0x241   : > { %842 = vmatpush.msrb.mxu3 %v802_v13 }
 0x242   : > { %1573 = vmatmul.msk.f32.vlgmr.msrb.gmra.mxu3 %vm491_vm0, %v1765_v6 }
 0x243   : > { %915 = vmatpush.msra.mxu3 %v1553_v14 }
 0x245   : > { %916 = vmatpush.msra.mxu3 %v1552_v15 }
 0x247   : > { %917 = vmatpush.msra.mxu3 %v1551_v16 }
 0x249   : > { %918 = vmatpush.msra.mxu3 %v1550_v17 }
 0x24a   : > { %1574 = vmatmul.msk.f32.gmra.mxu3 %vm491_vm0, %v1767_v7 }
 0x252   : > { %1579 = vmatmul.msk.f32.vlgmr.msra.gmra.mxu3 %vm550_vm1, %v800_v0 }
 0x25a   : > { %1580 = vmatmul.msk.f32.gmra.mxu3 %vm550_vm1, %v801_v62 }
 0x262   : > { %1581 = vmatmul.msk.f32.gmra.mxu3 %vm550_vm1, %v802_v13 }
 0x26a   : > { %1582 = vmatmul.msk.f32.gmra.mxu3 %vm550_vm1, %v803_v12 }
 0x2b5   : > { %v821_v22 = vpop.f32.mrf.mxu3 }
 0x2b6   : > { %1575 = vmatmul.msk.f32.vlgmr.msra.gmra.mxu2 %vm550_vm1, %v821_v22 }
 0x2bd   : > { %v824_v23 = vpop.f32.mrf.mxu3 }
 0x2be   : > { %1576 = vmatmul.msk.f32.gmra.mxu2 %vm550_vm1, %v824_v23 }
 0x2c5   : > { %v844_v24 = vpop.f32.mrf.mxu3 }
 0x2c6   : > { %1577 = vmatmul.msk.f32.gmra.mxu2 %vm550_vm1, %v844_v24  ;;  %v1595_v24 = vld [vmem:[%s2098_s5 + $0x78] sm:$0xff] }
 0x2cd   : > { %v847_v25 = vpop.f32.mrf.mxu3 }
 0x2ce   : > { %1578 = vmatmul.msk.f32.gmra.mxu2 %vm550_vm1, %v847_v25  ;;  %v1594_v25 = vld [vmem:[%s2098_s5 + $0x70] sm:$0xff] }
 0x2d5   : > { %v920_v26 = vpop.f32.mrf.mxu3 }
 0x2dd   : > { %v923_v28 = vpop.f32.mrf.mxu3 }
 0x2e5   : > { %v926_v41 = vpop.f32.mrf.mxu3 }
 0x2ed   : > { %v929_v46 = vpop.f32.mrf.mxu3 }
 0x339   : > { %v879_v27 = vpop.f32.mrf.mxu2 }
 0x33a   : > { %v921_v29 = vadd.f32 %v920_v26, %v879_v27  ;;  %v1593_v26 = vld [vmem:[%s2098_s5 + $0x68] sm:$0xff]  ;;  %v1592_v27 = vld [vmem:[%s2098_s5 + $0x60] sm:$0xff] }
 0x33c   : > { %v935_v34 = vadd.f32 %v1660_v32, %v921_v29  ;;  %v1598_v29 = vld [vmem:[%s2099_s6 + $0x70] sm:$0xff] }
 0x33e   : > { %v939_v38 = vadd.f32 %v935_v34, %v1814_v31 }
 0x340   : > { %v1919_v44 = vmax.f32 %v939_v38, 0.0 }
 0x341   : > { %v882_v33 = vpop.f32.mrf.mxu2 }
 0x342   : > { %v924_v35 = vadd.f32 %v923_v28, %v882_v33  ;;  %v1599_v28 = vld [vmem:[%s2099_s6 + $0x78] sm:$0xff]  ;;  %v1596_v33 = vld [vmem:[%s2099_s6 + $0x60] sm:$0xff] }
 0x344   : > { %v936_v36 = vadd.f32 %v1660_v32, %v924_v35 }
 0x346   : > { %v940_v37 = vadd.f32 %v936_v36, %v1812_v30 }
 0x348   : > { %v1916_v42 = vmax.f32 %v940_v37, 0.0 }
 0x349   : > { %v885_v43 = vpop.f32.mrf.mxu2 }
 0x34a   : > { %985 = vmatpush.msrb.mxu0 %v1916_v42  ;;  %v927_v45 = vadd.f32 %v926_v41, %v885_v43 }
 0x34c   : > { %986 = vmatpush.msrb.mxu0 %v1919_v44  ;;  %v937_v48 = vadd.f32 %v1660_v32, %v927_v45 }
 0x34d   : > { %1601 = vmatmul.msk.f32.vlgmr.msrb.gmra.mxu0 %vm491_vm0, %v1761_v2 }
 0x34e   : > { %v941_v50 = vadd.f32 %v937_v48, %v1824_v40  ;;  %v1584_v40 = vld [vmem:[%s2098_s5 + $0x48] sm:$0xff]  ;;  %1041 = vmatpush.msra.mxu0 %v1590_v55 }
 0x350   : > { %v1931_v52 = vmax.f32 %v941_v50, 0.0  ;;  %1042 = vmatpush.msra.mxu0 %v1589_v56 }
 0x351   : > { %v888_v47 = vpop.f32.mrf.mxu2 }
 0x352   : > { %v930_v30 = vadd.f32 %v929_v46, %v888_v47  ;;  %1043 = vmatpush.msra.mxu0 %v1588_v57  ;;  %v1662_v46 = vld [vmem:[%s2100_s7 + $0x3] ss:$0 sm:$0xff] }
 0x354   : > { %v938_v49 = vadd.f32 %v1660_v32, %v930_v30  ;;  %1044 = vmatpush.msra.mxu0 %v1587_v58  ;;  %v1597_v32 = vld [vmem:[%s2099_s6 + $0x68] sm:$0xff] }
 0x355   : > { %1602 = vmatmul.msk.f32.gmra.mxu0 %vm491_vm0, %v1763_v3 }
 0x356   : > { %v942_v31 = vadd.f32 %v938_v49, %v1822_v39  ;;  %v1585_v39 = vld [vmem:[%s2098_s5 + $0x50] sm:$0xff] }
 0x358   : > { %v1928_v51 = vmax.f32 %v942_v31, 0.0 }
 0x35a   : > { %1008 = vmatpush.msrb.mxu1 %v1928_v51 }
 0x35c   : > { %1009 = vmatpush.msrb.mxu1 %v1931_v52 }
 0x35d   : > { %1603 = vmatmul.msk.f32.vlgmr.msrb.gmra.mxu1 %vm491_vm0, %v1765_v6 }
 0x35e   : > { %1082 = vmatpush.msra.mxu1 %v1586_v53 }
 0x360   : > { %1083 = vmatpush.msra.mxu1 %v1585_v39 }
 0x362   : > { %1084 = vmatpush.msra.mxu1 %v1584_v40 }
 0x364   : > { %1085 = vmatpush.msra.mxu1 %v1583_v54 }
 0x365   : > { %1604 = vmatmul.msk.f32.gmra.mxu1 %vm491_vm0, %v1767_v7 }
 0x36d   : > { %1609 = vmatmul.msk.f32.vlgmr.msra.gmra.mxu1 %vm550_vm1, %v1919_v44 }
 0x375   : > { %1610 = vmatmul.msk.f32.gmra.mxu1 %vm550_vm1, %v1916_v42 }
 0x37d   : > { %1611 = vmatmul.msk.f32.gmra.mxu1 %vm550_vm1, %v1931_v52 }
 0x385   : > { %1612 = vmatmul.msk.f32.gmra.mxu1 %vm550_vm1, %v1928_v51 }
 0x3ca   : > { %v988_v59 = vpop.f32.mrf.mxu0 }
 0x3cb   : > { %1605 = vmatmul.msk.f32.vlgmr.msra.gmra.mxu0 %vm550_vm1, %v988_v59 }
 0x3d2   : > { %v991_v60 = vpop.f32.mrf.mxu0 }
 0x3d3   : > { %1606 = vmatmul.msk.f32.gmra.mxu0 %vm550_vm1, %v991_v60 }
 0x3da   : > { %v1011_v61 = vpop.f32.mrf.mxu1 }
 0x3db   : > { %1607 = vmatmul.msk.f32.gmra.mxu0 %vm550_vm1, %v1011_v61 }
 0x3e2   : > { %v1014_v62 = vpop.f32.mrf.mxu1 }
 0x3e3   : > { %1608 = vmatmul.msk.f32.gmra.mxu0 %vm550_vm1, %v1014_v62 }
 0x3ea   : > { %v1087_v63 = vpop.f32.mrf.mxu1 }
 0x3f2   : > { %v1090_v1 = vpop.f32.mrf.mxu1 }
 0x3fa   : > { %v1093_v13 = vpop.f32.mrf.mxu1 }
 0x402   : > { %v1096_v17 = vpop.f32.mrf.mxu1 }
 0x448   : > { %v1046_v0 = vpop.f32.mrf.mxu0 }
 0x449   : > { %v1088_v4 = vadd.f32 %v1087_v63, %v1046_v0  ;;  %v1255_v63 = vld [vmem:[%s2101_s8 + $0x10] sm:$0xff]  ;;  %v1258_v0 = vld [vmem:[%s2102_s9 + $0x8] sm:$0xff] }
 0x44b   : > { %v1102_v10 = vadd.f32 %v1661_v5, %v1088_v4 }
 0x44d   : > { %v1106_v14 = vmax.f32 %v1102_v10, 0.0  ;;  %v1403_v10 = vld [vmem:[%s2104_s11 + $0x10] sm:$0xff] }
 0x450   : > { %v1049_v8 = vpop.f32.mrf.mxu0 }
 0x451   : > { %v1091_v9 = vadd.f32 %v1090_v1, %v1049_v8 }
 0x453   : > { %v1103_v11 = vadd.f32 %v1661_v5, %v1091_v9  ;;  %v1404_v9 = vld [vmem:[%s2104_s11 + $0x18] sm:$0xff] }
 0x455   : > { %v1107_v12 = vmax.f32 %v1103_v11, 0.0  ;;  %v1402_v11 = vld [vmem:[%s2104_s11 + $0x8] sm:$0xff] }
 0x457   : > { %1124 = vmatpush.msrb.mxu2 %v1107_v12 }
 0x458   : > { %v1052_v15 = vpop.f32.mrf.mxu0 }
 0x459   : > { %1125 = vmatpush.msrb.mxu2 %v1106_v14  ;;  %v1094_v16 = vadd.f32 %v1093_v13, %v1052_v15 }
 0x45a   : > { %1613 = vmatmul.msk.f32.vlgmr.msrb.gmra.mxu2 %vm491_vm0, %v1761_v2 }
 0x45b   : > { %v1104_v20 = vadd.f32 %v1661_v5, %v1094_v16  ;;  %1180 = vmatpush.msra.mxu2 %v1599_v28 }
 0x45d   : > { %v1108_v23 = vmax.f32 %v1104_v20, 0.0  ;;  %1181 = vmatpush.msra.mxu2 %v1598_v29 }
 0x45f   : > { %1182 = vmatpush.msra.mxu2 %v1597_v32 }
 0x460   : > { %v1055_v18 = vpop.f32.mrf.mxu0 }
 0x461   : > { %v1097_v19 = vadd.f32 %v1096_v17, %v1055_v18  ;;  %1183 = vmatpush.msra.mxu2 %v1596_v33 }
 0x462   : > { %1614 = vmatmul.msk.f32.gmra.mxu2 %vm491_vm0, %v1763_v3 }
 0x463   : > { %v1105_v21 = vadd.f32 %v1661_v5, %v1097_v19  ;;  %1433 = vmatpush.msrb.mxu2 %v1404_v9 }
 0x465   : > { %v1109_v22 = vmax.f32 %v1105_v21, 0.0  ;;  %1434 = vmatpush.msrb.mxu2 %v1403_v10 }
 0x467   : > { %1147 = vmatpush.msrb.mxu3 %v1109_v22  ;;  %1435 = vmatpush.msrb.mxu2 %v1402_v11 }
 0x469   : > { %1148 = vmatpush.msrb.mxu3 %v1108_v23 }
 0x46a   : > { %1615 = vmatmul.msk.f32.vlgmr.msrb.gmra.mxu3 %vm491_vm0, %v1765_v6 }
 0x46b   : > { %1221 = vmatpush.msra.mxu3 %v1595_v24 }
 0x46d   : > { %1222 = vmatpush.msra.mxu3 %v1594_v25 }
 0x46f   : > { %1223 = vmatpush.msra.mxu3 %v1593_v26 }
 0x471   : > { %1224 = vmatpush.msra.mxu3 %v1592_v27 }
 0x472   : > { %1616 = vmatmul.msk.f32.gmra.mxu3 %vm491_vm0, %v1767_v7 }
 0x47a   : > { %1621 = vmatmul.msk.f32.vlgmr.msra.gmra.mxu3 %vm550_vm1, %v1106_v14  ;;  %v1663_v14 = vld [vmem:[%s2103_s10] ss:$0 sm:$0xff] }
 0x482   : > { %1622 = vmatmul.msk.f32.gmra.mxu3 %vm550_vm1, %v1107_v12  ;;  %v1401_v12 = vld [vmem:[%s2104_s11] sm:$0xff] }
 0x483   : > { %1436 = vmatpush.msrb.mxu2 %v1401_v12 }
 0x48a   : > { %1623 = vmatmul.msk.f32.gmra.mxu3 %vm550_vm1, %v1108_v23 }
 0x492   : > { %1624 = vmatmul.msk.f32.gmra.mxu3 %vm550_vm1, %v1109_v22 }
 0x4dd   : > { %v1127_v34 = vpop.f32.mrf.mxu2 }
 0x4de   : > { %1617 = vmatmul.msk.f32.vlgmr.msra.gmra.mxu2 %vm550_vm1, %v1127_v34 }
 0x4e5   : > { %v1130_v35 = vpop.f32.mrf.mxu2 }
 0x4e6   : > { %1618 = vmatmul.msk.f32.gmra.mxu2 %vm550_vm1, %v1130_v35 }
 0x4ed   : > { %v1150_v36 = vpop.f32.mrf.mxu3 }
 0x4ee   : > { %1619 = vmatmul.msk.f32.gmra.mxu2 %vm550_vm1, %v1150_v36  ;;  %v1664_v36 = vld [vmem:[%s2105_s12] ss:$0 sm:$0xff] }
 0x4f5   : > { %v1153_v37 = vpop.f32.mrf.mxu3 }
 0x4f6   : > { %1620 = vmatmul.msk.f32.gmra.mxu2 %vm550_vm1, %v1153_v37 }
 0x4fd   : > { %v1226_v38 = vpop.f32.mrf.mxu3 }
 0x505   : > { %v1229_v43 = vpop.f32.mrf.mxu3 }
 0x50d   : > { %v1232_v53 = vpop.f32.mrf.mxu3 }
 0x515   : > { %v1235_v56 = vpop.f32.mrf.mxu3 }
 0x561   : > { %v1185_v41 = vpop.f32.mrf.mxu2 }
 0x562   : > { %v1227_v45 = vadd.f32 %v1226_v38, %v1185_v41 }
 0x564   : > { %v1241_v48 = vadd.f32 %v1662_v46, %v1227_v45 }
 0x566   : > { %v1245_v50 = vadd.f32 %v1241_v48, %v1919_v44 }
 0x568   : > { %v1249_v54 = vmax.f32 %v1245_v50, 0.0 }
 0x569   : > { %v1188_v47 = vpop.f32.mrf.mxu2 }
 0x56a   : > { %v1230_v30 = vadd.f32 %v1229_v43, %v1188_v47 }
 0x56c   : > { %v1242_v49 = vadd.f32 %v1662_v46, %v1230_v30 }
 0x56e   : > { %v1246_v31 = vadd.f32 %v1242_v49, %v1916_v42 }
 0x570   : > { %v1250_v39 = vmax.f32 %v1246_v31, 0.0 }
 0x571   : > { %v1191_v40 = vpop.f32.mrf.mxu2 }
 0x572   : > { %1276 = vmatpush.msrb.mxu0 %v1250_v39  ;;  %v1233_v55 = vadd.f32 %v1232_v53, %v1191_v40 }
 0x574   : > { %1277 = vmatpush.msrb.mxu0 %v1249_v54  ;;  %v1243_v58 = vadd.f32 %v1662_v46, %v1233_v55 }
 0x575   : > { %1625 = vmatmul.msk.f32.vlgmr.msrb.gmra.mxu0 %vm491_vm0, %v1761_v2  ;;  %v1256_v2 = vld [vmem:[%s2101_s8 + $0x18] sm:$0xff] }
 0x576   : > { %v1247_v44 = vadd.f32 %v1243_v58, %v1931_v52  ;;  %v1259_v52 = vld [vmem:[%s2102_s9 + $0x10] sm:$0xff] }
 0x578   : > { %v1251_v62 = vmax.f32 %v1247_v44, 0.0 }
 0x579   : > { %v1194_v57 = vpop.f32.mrf.mxu2 }
 0x57a   : > { %v1236_v59 = vadd.f32 %v1235_v56, %v1194_v57 }
 0x57c   : > { %v1244_v60 = vadd.f32 %v1662_v46, %v1236_v59 }
 0x57d   : > { %1626 = vmatmul.msk.f32.gmra.mxu0 %vm491_vm0, %v1763_v3  ;;  %v1254_v3 = vld [vmem:[%s2101_s8 + $0x8] sm:$0xff] }
 0x57e   : > { %v1248_v42 = vadd.f32 %v1244_v60, %v1928_v51  ;;  %v1253_v51 = vld [vmem:[%s2101_s8] sm:$0xff] }
 0x580   : > { %v1252_v61 = vmax.f32 %v1248_v42, 0.0 }
 0x582   : > { %1299 = vmatpush.msrb.mxu1 %v1252_v61 }
 0x584   : > { %1300 = vmatpush.msrb.mxu1 %v1251_v62 }
 0x585   : > { %1627 = vmatmul.msk.f32.vlgmr.msrb.gmra.mxu1 %vm491_vm0, %v1765_v6  ;;  %v1260_v6 = vld [vmem:[%s2102_s9 + $0x18] sm:$0xff] }
 0x586   : > { %1373 = vmatpush.msra.mxu1 %v1256_v2  ;;  %1332 = vmatpush.msra.mxu0 %v1260_v6 }
 0x588   : > { %1374 = vmatpush.msra.mxu1 %v1255_v63  ;;  %1333 = vmatpush.msra.mxu0 %v1259_v52 }
 0x58a   : > { %1375 = vmatpush.msra.mxu1 %v1254_v3  ;;  %1334 = vmatpush.msra.mxu0 %v1258_v0 }
 0x58c   : > { %1376 = vmatpush.msra.mxu1 %v1253_v51 }
 0x58d   : > { %1628 = vmatmul.msk.f32.gmra.mxu1 %vm491_vm0, %v1767_v7  ;;  %v1257_v7 = vld [vmem:[%s2102_s9] sm:$0xff] }
 0x58e   : > { %1335 = vmatpush.msra.mxu0 %v1257_v7 }
 0x595   : > { %1633 = vmatmul.msk.f32.vlgmr.msra.gmra.mxu1 %vm550_vm1, %v1249_v54 }
 0x59d   : > { %1634 = vmatmul.msk.f32.gmra.mxu1 %vm550_vm1, %v1250_v39 }
 0x5a5   : > { %1635 = vmatmul.msk.f32.gmra.mxu1 %vm550_vm1, %v1251_v62 }
 0x5ad   : > { %1636 = vmatmul.msk.f32.gmra.mxu1 %vm550_vm1, %v1252_v61 }
 0x5f2   : > { %v1279_v1 = vpop.f32.mrf.mxu0 }
 0x5f3   : > { %1629 = vmatmul.msk.f32.vlgmr.msra.gmra.mxu0 %vm550_vm1, %v1279_v1 }
 0x5fa   : > { %v1282_v4 = vpop.f32.mrf.mxu0 }
 0x5fb   : > { %1630 = vmatmul.msk.f32.gmra.mxu0 %vm550_vm1, %v1282_v4 }
 0x602   : > { %v1302_v5 = vpop.f32.mrf.mxu1 }
 0x603   : > { %1631 = vmatmul.msk.f32.gmra.mxu0 %vm550_vm1, %v1302_v5 }
 0x60a   : > { %v1305_v8 = vpop.f32.mrf.mxu1 }
 0x60b   : > { %1632 = vmatmul.msk.f32.gmra.mxu0 %vm550_vm1, %v1305_v8 }
 0x612   : > { %v1378_v13 = vpop.f32.mrf.mxu1 }
 0x61a   : > { %v1381_v18 = vpop.f32.mrf.mxu1 }
 0x622   : > { %v1384_v24 = vpop.f32.mrf.mxu1 }
 0x62a   : > { %v1387_v29 = vpop.f32.mrf.mxu1 }
 0x670   : > { %v1337_v15 = vpop.f32.mrf.mxu0 }
 0x671   : > { %v1379_v16 = vadd.f32 %v1378_v13, %v1337_v15 }
 0x673   : > { %v1393_v17 = vadd.f32 %v1663_v14, %v1379_v16 }
 0x675   : > { %v1397_v19 = vmax.f32 %v1393_v17, 0.0 }
 0x677   : > { %1637 = vmatmul.msk.f32.vlgmr.msrb.gmra.mxu2 %vm550_vm1, %v1397_v19 }
 0x678   : > { %v1340_v20 = vpop.f32.mrf.mxu0 }
 0x679   : > { %v1382_v21 = vadd.f32 %v1381_v18, %v1340_v20 }
 0x67b   : > { %v1394_v22 = vadd.f32 %v1663_v14, %v1382_v21 }
 0x67d   : > { %v1398_v23 = vmax.f32 %v1394_v22, 0.0 }
 0x67f   : > { %1638 = vmatmul.msk.f32.gmra.mxu2 %vm550_vm1, %v1398_v23 }
 0x680   : > { %v1343_v25 = vpop.f32.mrf.mxu0 }
 0x681   : > { %v1385_v26 = vadd.f32 %v1384_v24, %v1343_v25 }
 0x683   : > { %v1395_v27 = vadd.f32 %v1663_v14, %v1385_v26 }
 0x685   : > { %v1399_v28 = vmax.f32 %v1395_v27, 0.0 }
 0x687   : > { %1639 = vmatmul.msk.f32.gmra.mxu2 %vm550_vm1, %v1399_v28 }
 0x688   : > { %v1346_v32 = vpop.f32.mrf.mxu0 }
 0x689   : > { %v1388_v33 = vadd.f32 %v1387_v29, %v1346_v32 }
 0x68b   : > { %v1396_v34 = vadd.f32 %v1663_v14, %v1388_v33 }
 0x68d   : > { %v1400_v35 = vmax.f32 %v1396_v34, 0.0 }
 0x68f   : > { %1640 = vmatmul.msk.f32.gmra.mxu2 %vm550_vm1, %v1400_v35 }
 0x6fa   : > { %v1438_v37 = vpop.f32.mrf.mxu2 }
 0x6fb   : > { %v1439_v38 = vadd.f32 %v1664_v36, %v1438_v37 }
 0x6fd   : > { %1450 = vst [vmem:[%s472_s18] sm:$0xff] %v1439_v38 }
 0x702   : > { %v1441_v41 = vpop.f32.mrf.mxu2 }
 0x703   : > { %v1442_v43 = vadd.f32 %v1664_v36, %v1441_v41 }
 0x705   : > { %1451 = vst [vmem:[%s472_s18 + $0x8] sm:$0xff] %v1442_v43 }
 0x70a   : > { %v1444_v45 = vpop.f32.mrf.mxu2 }
 0x70b   : > { %v1445_v46 = vadd.f32 %v1664_v36, %v1444_v45 }
 0x70d   : > { %1452 = vst [vmem:[%s472_s18 + $0x10] sm:$0xff] %v1445_v46 }
 0x712   : > { %v1447_v47 = vpop.f32.mrf.mxu2 }
 0x713   : > { %v1448_v48 = vadd.f32 %v1664_v36, %v1447_v47 }
 0x715   : > { %1453 = vst [vmem:[%s472_s18 + $0x18] sm:$0xff] %v1448_v48 }
 0x716 PF: > { %s23_s25 = sadd.s32 1, %s1671_s25  }
 0x717   : > { %p20_p4 = scmp.ge.s32.totalorder %s23_s25, 4  }
 0x719   :  { %22 = sbr.rel (!%p20_p4) target bundleno = 1 (0x1), region = 114 }

</bundles_post_ra>
